<compile_context>
chip_gen: v6e
topology: v6e:2x2x1
jax: 0.10.0
libtpu: 0.0.40
codegen_flags: <defaults>
</compile_context>

<pallas_src>
import functools

import jax
import jax.numpy as jnp
import numpy as np
from jax import lax
from jax.experimental import pallas as pl
from jax.experimental.pallas import tpu as pltpu

LANE = 128          # lane tile (last dim)
MAX_T_BLK = 8       # time steps fused per grid step
MAX_R_TILE = 512    # sublanes per feature tile (512*128*4B = 256 KiB per step)


def _round_up(x, m):
    return (x + m - 1) // m * m


def _lif_kernel(x_ref, y_ref, v_ref, *, decay, threshold, rest, t_blk):
    """One (feature-tile, time-block) grid point of the LIF recurrence.

    NOTE: the time axis MUST be the innermost grid axis (and be marked
    "arbitrary") so that, for a fixed feature tile, v_ref (VMEM scratch) is
    carried sequentially across time blocks; the @pl.when(tb == 0) init and
    the recurrence both rely on that iteration order.
    """
    tb = pl.program_id(1)

    @pl.when(tb == 0)
    def _():
        v_ref[...] = jnp.full(v_ref.shape, jnp.float32(rest), v_ref.dtype)

    decay_f = jnp.float32(decay)
    thr_f = jnp.float32(threshold)
    rest_f = jnp.float32(rest)
    one = jnp.float32(1.0)
    zero = jnp.float32(0.0)

    v = v_ref[...]
    for i in range(t_blk):                     # static unroll over the slab
        v = v * decay_f + x_ref[i].astype(jnp.float32)   # leak + integrate
        spike = v >= thr_f                                # fire
        y_ref[i] = jnp.where(spike, one, zero).astype(y_ref.dtype)
        v = jnp.where(spike, rest_f, v)                   # hard reset
    v_ref[...] = v


def lif_forward(tx, *, decay=0.2, threshold=0.3, rest=0.0, time_step=None):
    """Pallas LIF forward. tx: [T, ...] time-major, any trailing dims/dtype."""
    orig_shape = tx.shape
    T = orig_shape[0]
    if time_step is not None:
        assert time_step == T, "time_step must match leading (time) dim"

    N = int(np.prod(orig_shape[1:])) if len(orig_shape) > 1 else 1
    itemsize = jnp.dtype(tx.dtype).itemsize
    # Minimum sublane multiple so packed vregs aren't split:
    # f32 -> 8, bf16 -> 16, int8/fp8 -> 32.
    sub_min = 8 * max(1, 4 // itemsize)

    # --- feature tiling -----------------------------------------------------
    R = max(1, -(-N // LANE))                  # rows of 128 lanes
    if R > 2 * MAX_R_TILE:
        r_tile = MAX_R_TILE
    elif R > 256:
        # split into two feature tiles so both v7x TensorCores get work
        r_tile = _round_up(-(-R // 2), sub_min)
    else:
        r_tile = _round_up(R, sub_min)         # single feature tile
    Rp = _round_up(R, r_tile)

    # --- time blocking ------------------------------------------------------
    t_blk = max(1, min(T, MAX_T_BLK))
    Tp = _round_up(T, t_blk)

    # Pad/reshape to [Tp, Rp, LANE] (one pad covers both time & features).
    x = tx.reshape(T, N)
    Np = Rp * LANE
    if (Tp, Np) != (T, N):
        x = jnp.pad(x, ((0, Tp - T), (0, Np - N)))
    x = x.reshape(Tp, Rp, LANE)

    kernel = functools.partial(
        _lif_kernel, decay=float(decay), threshold=float(threshold),
        rest=float(rest), t_blk=t_blk)

    # VMEM budget (worst case, f32): block = 8*512*128*4 = 2 MiB;
    # 2x input bufs + 2x output bufs + 256 KiB scratch ~= 8.25 MiB
    # < 16 MiB (v5e default scoped VMEM), < 32 MiB (v6e/v7x default).
    y = pl.pallas_call(
        kernel,
        out_shape=jax.ShapeDtypeStruct((Tp, Rp, LANE), tx.dtype),
        grid_spec=pltpu.PrefetchScalarGridSpec(
            num_scalar_prefetch=0,
            grid=(Rp // r_tile, Tp // t_blk),     # time innermost -> carried v
            in_specs=[pl.BlockSpec((t_blk, r_tile, LANE),
                                   lambda n, t: (t, n, 0))],
            out_specs=pl.BlockSpec((t_blk, r_tile, LANE),
                                   lambda n, t: (t, n, 0)),
            scratch_shapes=[pltpu.VMEM((r_tile, LANE), jnp.float32)],
        ),
        compiler_params=pltpu.CompilerParams(
            dimension_semantics=("parallel", "arbitrary")),
    )(x)

    y = y[:T].reshape(T, Np)[:, :N].reshape(orig_shape)
    return y


def lif_reference(tx, *, decay=0.2, threshold=0.3, rest=0.0):
    """Pure-JAX reference (lax.scan over time) for validation."""
    def step(v, x_t):
        v = decay * v + x_t.astype(jnp.float32)
        spike = (v >= threshold)
        v = jnp.where(spike, jnp.float32(rest), v)
        return v, spike.astype(tx.dtype)

    v0 = jnp.full(tx.shape[1:], rest, dtype=jnp.float32)
    _, ty = lax.scan(step, v0, tx)
    return ty


if __name__ == "__main__":
    decay, threshold, rest = 0.2, 0.3, 0.0

    # Case 1: float32, shapes matching the module's tx = [T, B, C, H, W].
    key = jax.random.PRNGKey(0)
    T, B, C, H, W = 8, 2, 4, 16, 16
    tx = jax.random.normal(key, (T, B, C, H, W), dtype=jnp.float32) * 0.5

    ty = jax.block_until_ready(
        lif_forward(tx, decay=decay, threshold=threshold, rest=rest,
                    time_step=T))
    ty_ref = lif_reference(tx, decay=decay, threshold=threshold, rest=rest)
    np.testing.assert_allclose(np.asarray(ty), np.asarray(ty_ref),
                               rtol=0, atol=0)
    assert ty.shape == tx.shape and ty.dtype == tx.dtype

    # Case 2: bfloat16 + ragged shapes (exercises time/feature padding and
    # the 16-sublane packed-dtype tiling).
    key2 = jax.random.PRNGKey(0)
    tx2 = (jax.random.normal(key2, (10, 2, 3, 7, 5), dtype=jnp.float32)
           * 0.5).astype(jnp.bfloat16)
    ty2 = jax.block_until_ready(
        lif_forward(tx2, decay=decay, threshold=threshold, rest=rest))
    ty2_ref = lif_reference(tx2, decay=decay, threshold=threshold, rest=rest)
    np.testing.assert_allclose(
        np.asarray(ty2.astype(jnp.float32)),
        np.asarray(ty2_ref.astype(jnp.float32)), rtol=0, atol=0)
    assert ty2.shape == tx2.shape and ty2.dtype == tx2.dtype

    print("KERNEL_OK")
</pallas_src>

<mosaic_0001>
module attributes {stable_mosaic.version = 11 : i64} {
  func.func @_lif_kernel(%arg0: i32, %arg1: i32, %arg2: memref<8x16x128xf32, #tpu.memory_space<vmem>>, %arg3: memref<8x16x128xf32, #tpu.memory_space<vmem>>, %arg4: memref<16x128xf32, #tpu.memory_space<vmem>>) attributes {dimension_semantics = [#tpu.dimension_semantics<parallel>, #tpu.dimension_semantics<arbitrary>], iteration_bounds = array<i64: 1, 1>, scalar_prefetch = 0 : i64, scratch_operands = 1 : i64, tpu.core_type = #tpu.core_type<tc>, window_params = [{transform_indices = @transform_0, window_bounds = array<i64: 8, 16, 128>}, {transform_indices = @transform_1, window_bounds = array<i64: 8, 16, 128>}]} {
    %c0_i32 = arith.constant 0 : i32
    %0 = arith.cmpi eq, %arg1, %c0_i32 : i32
    %1 = arith.extui %0 : i1 to i32
    %c0_i32_0 = arith.constant 0 : i32
    %2 = arith.cmpi ne, %1, %c0_i32_0 : i32
    scf.if %2 {
      %cst_84 = arith.constant 0.000000e+00 : f32
      %125 = vector.broadcast %cst_84 : f32 to vector<16x128xf32>
      %c0_85 = arith.constant 0 : index
      %c0_86 = arith.constant 0 : index
      %126 = vector.load %arg4[%c0_85, %c0_86] : memref<16x128xf32, #tpu.memory_space<vmem>>, vector<16x128xf32>
      tpu.vector_store %arg4[%c0_85, %c0_86], %125 {strides = array<i32>} : memref<16x128xf32, #tpu.memory_space<vmem>>, vector<16x128xf32>,
    } else {
    }
    %c0 = arith.constant 0 : index
    %c0_1 = arith.constant 0 : index
    %3 = vector.load %arg4[%c0, %c0_1] : memref<16x128xf32, #tpu.memory_space<vmem>>, vector<16x128xf32>
    %cst = arith.constant 2.000000e-01 : f32
    %4 = vector.broadcast %cst : f32 to vector<16x128xf32>
    %5 = arith.mulf %3, %4 : vector<16x128xf32>
    %c0_2 = arith.constant 0 : index
    %c0_3 = arith.constant 0 : index
    %c0_4 = arith.constant 0 : index
    %6 = vector.load %arg2[%c0_2, %c0_3, %c0_4] : memref<8x16x128xf32, #tpu.memory_space<vmem>>, vector<1x16x128xf32>
    %7 = vector.shape_cast %6 : vector<1x16x128xf32> to vector<16x128xf32>
    %8 = arith.addf %5, %7 : vector<16x128xf32>
    %cst_5 = arith.constant 3.000000e-01 : f32
    %9 = vector.broadcast %cst_5 : f32 to vector<16x128xf32>
    %10 = arith.cmpf oge, %8, %9 : vector<16x128xf32>
    %cst_6 = arith.constant 1.000000e+00 : f32
    %cst_7 = arith.constant 0.000000e+00 : f32
    %11 = vector.broadcast %cst_6 : f32 to vector<16x128xf32>
    %12 = vector.broadcast %cst_7 : f32 to vector<16x128xf32>
    %13 = arith.select %10, %11, %12 : vector<16x128xi1>, vector<16x128xf32>
    %c0_8 = arith.constant 0 : index
    %c0_9 = arith.constant 0 : index
    %c0_10 = arith.constant 0 : index
    %14 = vector.load %arg3[%c0_8, %c0_9, %c0_10] : memref<8x16x128xf32, #tpu.memory_space<vmem>>, vector<1x16x128xf32>
    %15 = vector.shape_cast %14 : vector<1x16x128xf32> to vector<16x128xf32>
    %16 = vector.shape_cast %13 : vector<16x128xf32> to vector<1x16x128xf32>
    tpu.vector_store %arg3[%c0_8, %c0_9, %c0_10], %16 {strides = array<i32>} : memref<8x16x128xf32, #tpu.memory_space<vmem>>, vector<1x16x128xf32>,
    %cst_11 = arith.constant 0.000000e+00 : f32
    %17 = vector.broadcast %cst_11 : f32 to vector<16x128xf32>
    %18 = arith.select %10, %17, %8 : vector<16x128xi1>, vector<16x128xf32>
    %cst_12 = arith.constant 2.000000e-01 : f32
    %19 = vector.broadcast %cst_12 : f32 to vector<16x128xf32>
    %20 = arith.mulf %18, %19 : vector<16x128xf32>
    %c1 = arith.constant 1 : index
    %c0_13 = arith.constant 0 : index
    %c0_14 = arith.constant 0 : index
    %21 = vector.load %arg2[%c1, %c0_13, %c0_14] : memref<8x16x128xf32, #tpu.memory_space<vmem>>, vector<1x16x128xf32>
    %22 = vector.shape_cast %21 : vector<1x16x128xf32> to vector<16x128xf32>
    %23 = arith.addf %20, %22 : vector<16x128xf32>
    %cst_15 = arith.constant 3.000000e-01 : f32
    %24 = vector.broadcast %cst_15 : f32 to vector<16x128xf32>
    %25 = arith.cmpf oge, %23, %24 : vector<16x128xf32>
    %cst_16 = arith.constant 1.000000e+00 : f32
    %cst_17 = arith.constant 0.000000e+00 : f32
    %26 = vector.broadcast %cst_16 : f32 to vector<16x128xf32>
    %27 = vector.broadcast %cst_17 : f32 to vector<16x128xf32>
    %28 = arith.select %25, %26, %27 : vector<16x128xi1>, vector<16x128xf32>
    %c1_18 = arith.constant 1 : index
    %c0_19 = arith.constant 0 : index
    %c0_20 = arith.constant 0 : index
    %29 = vector.load %arg3[%c1_18, %c0_19, %c0_20] : memref<8x16x128xf32, #tpu.memory_space<vmem>>, vector<1x16x128xf32>
    %30 = vector.shape_cast %29 : vector<1x16x128xf32> to vector<16x128xf32>
    %31 = vector.shape_cast %28 : vector<16x128xf32> to vector<1x16x128xf32>
    tpu.vector_store %arg3[%c1_18, %c0_19, %c0_20], %31 {strides = array<i32>} : memref<8x16x128xf32, #tpu.memory_space<vmem>>, vector<1x16x128xf32>,
    %cst_21 = arith.constant 0.000000e+00 : f32
    %32 = vector.broadcast %cst_21 : f32 to vector<16x128xf32>
    %33 = arith.select %25, %32, %23 : vector<16x128xi1>, vector<16x128xf32>
    %cst_22 = arith.constant 2.000000e-01 : f32
    %34 = vector.broadcast %cst_22 : f32 to vector<16x128xf32>
    %35 = arith.mulf %33, %34 : vector<16x128xf32>
    %c2 = arith.constant 2 : index
    %c0_23 = arith.constant 0 : index
    %c0_24 = arith.constant 0 : index
    %36 = vector.load %arg2[%c2, %c0_23, %c0_24] : memref<8x16x128xf32, #tpu.memory_space<vmem>>, vector<1x16x128xf32>
    %37 = vector.shape_cast %36 : vector<1x16x128xf32> to vector<16x128xf32>
    %38 = arith.addf %35, %37 : vector<16x128xf32>
    %cst_25 = arith.constant 3.000000e-01 : f32
    %39 = vector.broadcast %cst_25 : f32 to vector<16x128xf32>
    %40 = arith.cmpf oge, %38, %39 : vector<16x128xf32>
    %cst_26 = arith.constant 1.000000e+00 : f32
    %cst_27 = arith.constant 0.000000e+00 : f32
    %41 = vector.broadcast %cst_26 : f32 to vector<16x128xf32>
    %42 = vector.broadcast %cst_27 : f32 to vector<16x128xf32>
    %43 = arith.select %40, %41, %42 : vector<16x128xi1>, vector<16x128xf32>
    %c2_28 = arith.constant 2 : index
    %c0_29 = arith.constant 0 : index
    %c0_30 = arith.constant 0 : index
    %44 = vector.load %arg3[%c2_28, %c0_29, %c0_30] : memref<8x16x128xf32, #tpu.memory_space<vmem>>, vector<1x16x128xf32>
    %45 = vector.shape_cast %44 : vector<1x16x128xf32> to vector<16x128xf32>
    %46 = vector.shape_cast %43 : vector<16x128xf32> to vector<1x16x128xf32>
    tpu.vector_store %arg3[%c2_28, %c0_29, %c0_30], %46 {strides = array<i32>} : memref<8x16x128xf32, #tpu.memory_space<vmem>>, vector<1x16x128xf32>,
    %cst_31 = arith.constant 0.000000e+00 : f32
    %47 = vector.broadcast %cst_31 : f32 to vector<16x128xf32>
    %48 = arith.select %40, %47, %38 : vector<16x128xi1>, vector<16x128xf32>
    %cst_32 = arith.constant 2.000000e-01 : f32
    %49 = vector.broadcast %cst_32 : f32 to vector<16x128xf32>
    %50 = arith.mulf %48, %49 : vector<16x128xf32>
    %c3 = arith.constant 3 : index
    %c0_33 = arith.constant 0 : index
    %c0_34 = arith.constant 0 : index
    %51 = vector.load %arg2[%c3, %c0_33, %c0_34] : memref<8x16x128xf32, #tpu.memory_space<vmem>>, vector<1x16x128xf32>
    %52 = vector.shape_cast %51 : vector<1x16x128xf32> to vector<16x128xf32>
    %53 = arith.addf %50, %52 : vector<16x128xf32>
    %cst_35 = arith.constant 3.000000e-01 : f32
    %54 = vector.broadcast %cst_35 : f32 to vector<16x128xf32>
    %55 = arith.cmpf oge, %53, %54 : vector<16x128xf32>
    %cst_36 = arith.constant 1.000000e+00 : f32
    %cst_37 = arith.constant 0.000000e+00 : f32
    %56 = vector.broadcast %cst_36 : f32 to vector<16x128xf32>
    %57 = vector.broadcast %cst_37 : f32 to vector<16x128xf32>
    %58 = arith.select %55, %56, %57 : vector<16x128xi1>, vector<16x128xf32>
    %c3_38 = arith.constant 3 : index
    %c0_39 = arith.constant 0 : index
    %c0_40 = arith.constant 0 : index
    %59 = vector.load %arg3[%c3_38, %c0_39, %c0_40] : memref<8x16x128xf32, #tpu.memory_space<vmem>>, vector<1x16x128xf32>
    %60 = vector.shape_cast %59 : vector<1x16x128xf32> to vector<16x128xf32>
    %61 = vector.shape_cast %58 : vector<16x128xf32> to vector<1x16x128xf32>
    tpu.vector_store %arg3[%c3_38, %c0_39, %c0_40], %61 {strides = array<i32>} : memref<8x16x128xf32, #tpu.memory_space<vmem>>, vector<1x16x128xf32>,
    %cst_41 = arith.constant 0.000000e+00 : f32
    %62 = vector.broadcast %cst_41 : f32 to vector<16x128xf32>
    %63 = arith.select %55, %62, %53 : vector<16x128xi1>, vector<16x128xf32>
    %cst_42 = arith.constant 2.000000e-01 : f32
    %64 = vector.broadcast %cst_42 : f32 to vector<16x128xf32>
    %65 = arith.mulf %63, %64 : vector<16x128xf32>
    %c4 = arith.constant 4 : index
    %c0_43 = arith.constant 0 : index
    %c0_44 = arith.constant 0 : index
    %66 = vector.load %arg2[%c4, %c0_43, %c0_44] : memref<8x16x128xf32, #tpu.memory_space<vmem>>, vector<1x16x128xf32>
    %67 = vector.shape_cast %66 : vector<1x16x128xf32> to vector<16x128xf32>
    %68 = arith.addf %65, %67 : vector<16x128xf32>
    %cst_45 = arith.constant 3.000000e-01 : f32
    %69 = vector.broadcast %cst_45 : f32 to vector<16x128xf32>
    %70 = arith.cmpf oge, %68, %69 : vector<16x128xf32>
    %cst_46 = arith.constant 1.000000e+00 : f32
    %cst_47 = arith.constant 0.000000e+00 : f32
    %71 = vector.broadcast %cst_46 : f32 to vector<16x128xf32>
    %72 = vector.broadcast %cst_47 : f32 to vector<16x128xf32>
    %73 = arith.select %70, %71, %72 : vector<16x128xi1>, vector<16x128xf32>
    %c4_48 = arith.constant 4 : index
    %c0_49 = arith.constant 0 : index
    %c0_50 = arith.constant 0 : index
    %74 = vector.load %arg3[%c4_48, %c0_49, %c0_50] : memref<8x16x128xf32, #tpu.memory_space<vmem>>, vector<1x16x128xf32>
    %75 = vector.shape_cast %74 : vector<1x16x128xf32> to vector<16x128xf32>
    %76 = vector.shape_cast %73 : vector<16x128xf32> to vector<1x16x128xf32>
    tpu.vector_store %arg3[%c4_48, %c0_49, %c0_50], %76 {strides = array<i32>} : memref<8x16x128xf32, #tpu.memory_space<vmem>>, vector<1x16x128xf32>,
    %cst_51 = arith.constant 0.000000e+00 : f32
    %77 = vector.broadcast %cst_51 : f32 to vector<16x128xf32>
    %78 = arith.select %70, %77, %68 : vector<16x128xi1>, vector<16x128xf32>
    %cst_52 = arith.constant 2.000000e-01 : f32
    %79 = vector.broadcast %cst_52 : f32 to vector<16x128xf32>
    %80 = arith.mulf %78, %79 : vector<16x128xf32>
    %c5 = arith.constant 5 : index
    %c0_53 = arith.constant 0 : index
    %c0_54 = arith.constant 0 : index
    %81 = vector.load %arg2[%c5, %c0_53, %c0_54] : memref<8x16x128xf32, #tpu.memory_space<vmem>>, vector<1x16x128xf32>
    %82 = vector.shape_cast %81 : vector<1x16x128xf32> to vector<16x128xf32>
    %83 = arith.addf %80, %82 : vector<16x128xf32>
    %cst_55 = arith.constant 3.000000e-01 : f32
    %84 = vector.broadcast %cst_55 : f32 to vector<16x128xf32>
    %85 = arith.cmpf oge, %83, %84 : vector<16x128xf32>
    %cst_56 = arith.constant 1.000000e+00 : f32
    %cst_57 = arith.constant 0.000000e+00 : f32
    %86 = vector.broadcast %cst_56 : f32 to vector<16x128xf32>
    %87 = vector.broadcast %cst_57 : f32 to vector<16x128xf32>
    %88 = arith.select %85, %86, %87 : vector<16x128xi1>, vector<16x128xf32>
    %c5_58 = arith.constant 5 : index
    %c0_59 = arith.constant 0 : index
    %c0_60 = arith.constant 0 : index
    %89 = vector.load %arg3[%c5_58, %c0_59, %c0_60] : memref<8x16x128xf32, #tpu.memory_space<vmem>>, vector<1x16x128xf32>
    %90 = vector.shape_cast %89 : vector<1x16x128xf32> to vector<16x128xf32>
    %91 = vector.shape_cast %88 : vector<16x128xf32> to vector<1x16x128xf32>
    tpu.vector_store %arg3[%c5_58, %c0_59, %c0_60], %91 {strides = array<i32>} : memref<8x16x128xf32, #tpu.memory_space<vmem>>, vector<1x16x128xf32>,
    %cst_61 = arith.constant 0.000000e+00 : f32
    %92 = vector.broadcast %cst_61 : f32 to vector<16x128xf32>
    %93 = arith.select %85, %92, %83 : vector<16x128xi1>, vector<16x128xf32>
    %cst_62 = arith.constant 2.000000e-01 : f32
    %94 = vector.broadcast %cst_62 : f32 to vector<16x128xf32>
    %95 = arith.mulf %93, %94 : vector<16x128xf32>
    %c6 = arith.constant 6 : index
    %c0_63 = arith.constant 0 : index
    %c0_64 = arith.constant 0 : index
    %96 = vector.load %arg2[%c6, %c0_63, %c0_64] : memref<8x16x128xf32, #tpu.memory_space<vmem>>, vector<1x16x128xf32>
    %97 = vector.shape_cast %96 : vector<1x16x128xf32> to vector<16x128xf32>
    %98 = arith.addf %95, %97 : vector<16x128xf32>
    %cst_65 = arith.constant 3.000000e-01 : f32
    %99 = vector.broadcast %cst_65 : f32 to vector<16x128xf32>
    %100 = arith.cmpf oge, %98, %99 : vector<16x128xf32>
    %cst_66 = arith.constant 1.000000e+00 : f32
    %cst_67 = arith.constant 0.000000e+00 : f32
    %101 = vector.broadcast %cst_66 : f32 to vector<16x128xf32>
    %102 = vector.broadcast %cst_67 : f32 to vector<16x128xf32>
    %103 = arith.select %100, %101, %102 : vector<16x128xi1>, vector<16x128xf32>
    %c6_68 = arith.constant 6 : index
    %c0_69 = arith.constant 0 : index
    %c0_70 = arith.constant 0 : index
    %104 = vector.load %arg3[%c6_68, %c0_69, %c0_70] : memref<8x16x128xf32, #tpu.memory_space<vmem>>, vector<1x16x128xf32>
    %105 = vector.shape_cast %104 : vector<1x16x128xf32> to vector<16x128xf32>
    %106 = vector.shape_cast %103 : vector<16x128xf32> to vector<1x16x128xf32>
    tpu.vector_store %arg3[%c6_68, %c0_69, %c0_70], %106 {strides = array<i32>} : memref<8x16x128xf32, #tpu.memory_space<vmem>>, vector<1x16x128xf32>,
    %cst_71 = arith.constant 0.000000e+00 : f32
    %107 = vector.broadcast %cst_71 : f32 to vector<16x128xf32>
    %108 = arith.select %100, %107, %98 : vector<16x128xi1>, vector<16x128xf32>
    %cst_72 = arith.constant 2.000000e-01 : f32
    %109 = vector.broadcast %cst_72 : f32 to vector<16x128xf32>
    %110 = arith.mulf %108, %109 : vector<16x128xf32>
    %c7 = arith.constant 7 : index
    %c0_73 = arith.constant 0 : index
    %c0_74 = arith.constant 0 : index
    %111 = vector.load %arg2[%c7, %c0_73, %c0_74] : memref<8x16x128xf32, #tpu.memory_space<vmem>>, vector<1x16x128xf32>
    %112 = vector.shape_cast %111 : vector<1x16x128xf32> to vector<16x128xf32>
    %113 = arith.addf %110, %112 : vector<16x128xf32>
    %cst_75 = arith.constant 3.000000e-01 : f32
    %114 = vector.broadcast %cst_75 : f32 to vector<16x128xf32>
    %115 = arith.cmpf oge, %113, %114 : vector<16x128xf32>
    %cst_76 = arith.constant 1.000000e+00 : f32
    %cst_77 = arith.constant 0.000000e+00 : f32
    %116 = vector.broadcast %cst_76 : f32 to vector<16x128xf32>
    %117 = vector.broadcast %cst_77 : f32 to vector<16x128xf32>
    %118 = arith.select %115, %116, %117 : vector<16x128xi1>, vector<16x128xf32>
    %c7_78 = arith.constant 7 : index
    %c0_79 = arith.constant 0 : index
    %c0_80 = arith.constant 0 : index
    %119 = vector.load %arg3[%c7_78, %c0_79, %c0_80] : memref<8x16x128xf32, #tpu.memory_space<vmem>>, vector<1x16x128xf32>
    %120 = vector.shape_cast %119 : vector<1x16x128xf32> to vector<16x128xf32>
    %121 = vector.shape_cast %118 : vector<16x128xf32> to vector<1x16x128xf32>
    tpu.vector_store %arg3[%c7_78, %c0_79, %c0_80], %121 {strides = array<i32>} : memref<8x16x128xf32, #tpu.memory_space<vmem>>, vector<1x16x128xf32>,
    %cst_81 = arith.constant 0.000000e+00 : f32
    %122 = vector.broadcast %cst_81 : f32 to vector<16x128xf32>
    %123 = arith.select %115, %122, %113 : vector<16x128xi1>, vector<16x128xf32>
    %c0_82 = arith.constant 0 : index
    %c0_83 = arith.constant 0 : index
    %124 = vector.load %arg4[%c0_82, %c0_83] : memref<16x128xf32, #tpu.memory_space<vmem>>, vector<16x128xf32>
    tpu.vector_store %arg4[%c0_82, %c0_83], %123 {strides = array<i32>} : memref<16x128xf32, #tpu.memory_space<vmem>>, vector<16x128xf32>,
    return
  }
  func.func @transform_0(%arg0: i32, %arg1: i32) -> (i32, i32, i32) {
    %c0_i32 = arith.constant 0 : i32
    %c0_i32_0 = arith.constant 0 : i32
    return %arg1, %arg0, %c0_i32 : i32, i32, i32
  }
  func.func @transform_1(%arg0: i32, %arg1: i32) -> (i32, i32, i32) {
    %c0_i32 = arith.constant 0 : i32
    %c0_i32_0 = arith.constant 0 : i32
    return %arg1, %arg0, %c0_i32 : i32, i32, i32
  }
}

</mosaic_0001>

<bundles_post_ra>
// kernel: tpu_custom_call.1
= control target key start
LH: loop header
LB: loop body
LE: loop exit
PB: predicated region body
PF: predicated region fallthrough
CT: control target
= control target key end

     0   :  { %6 = vsyncpa [#allocation4], 0  ;;  %s268_s0 = inlined_call_operand.hbm [shape: f32[8,16,128], index: 0, kind: input, shape index: {}]   ;;  %s269_s1 = inlined_call_operand.hbm [shape: f32[8,16,128], index: 1, kind: output, shape index: {}]  }
   0x1   :  { %7 = vsyncpa [#allocation5], 0  ;;  %s225_s6 = smov [#allocation3]  }
   0x2   :  { %s13_s7 = sshll.u32 %s225_s6, 4  ;;  %s14_s7 = int_to_ptr.vmem [resolvable:$true] %s13_s7 }
   0x3   :  { %s189_s8 = scalar_lea.vmem %s14_s7, 2048  ;;  %p194_p1 = scmp.lt.s32.totalorder %s14_s7, %s14_s7 }
   0x4   :  { %p190_p0 = scmp.ne.s32.totalorder %s14_s7, %s189_s8  ;;  %p195_p2 = scmp.lt.s32.totalorder %s189_s8, %s189_s8 }
   0x6   :  { %p196_p3 = por %p195_p2, %p194_p1 }
   0x8   :  { %p197_p4 = pnand %p196_p3, %p190_p0 }
   0xa   :  { %200 = shalt.err (!%p197_p4)
}
   0xb   :  { %s226_s9 = smov 128   ;;  %s227_s10 = smov 8  }
   0xc   :  { %19 = dma.hbm_to_vmem [thread:$0]  %s268_s0, 2048, %s14_s7, [#allocation4], %s226_s9, %s226_s9, %s227_s10  }
   0xd   :  { %221 = dma.done.wait [#allocation4], 2048  }
   0xe   :  { %222 = vsyncadd [#allocation4], 4294965248  ;;  %v33_v0 = vld [vmem:[#allocation3] sm:$0xff]  ;;  %v34_v1 = vld [vmem:[#allocation3 + $0x8] sm:$0xff]  ;;  %v228_v2 = vmov 0.0   ;;  %s229_s0 = smov [#allocation6]  }
   0xf   :  { %vm37_vm0 = vcmp.ge.f32.partialorder %v33_v0, 0.3  ;;  %vm38_vm1 = vcmp.ge.f32.partialorder %v34_v1, 0.3  ;;  %v48_v7 = vld [vmem:[#allocation3 + $0x10] sm:$0xff]  ;;  %v49_v8 = vld [vmem:[#allocation3 + $0x18] sm:$0xff] }
  0x10   :  { %v39_v3 = vsel %vm37_vm0, 1.0, %v228_v2  ;;  %v43_v4 = vsel %vm37_vm0, 0.0, %v33_v0  ;;  %v40_v5 = vsel %vm38_vm1, 1.0, %v228_v2  ;;  %v44_v6 = vsel %vm38_vm1, 0.0, %v34_v1  ;;  %v64_v17 = vld [vmem:[#allocation3 + $0x20] sm:$0xff]  ;;  %v65_v18 = vld [vmem:[#allocation3 + $0x28] sm:$0xff] }
  0x11   :  { %41 = vst [vmem:[#allocation6] sm:$0xff] %v39_v3  ;;  %v45_v9 = vmul.f32 0.2, %v43_v4  ;;  %42 = vst [vmem:[#allocation6 + $0x8] sm:$0xff] %v40_v5  ;;  %v46_v10 = vmul.f32 0.2, %v44_v6 }
  0x12   :  { %v80_v27 = vld [vmem:[#allocation3 + $0x30] sm:$0xff]  ;;  %v81_v28 = vld [vmem:[#allocation3 + $0x38] sm:$0xff]  ;;  %v96_v37 = vld [vmem:[#allocation3 + $0x40] sm:$0xff]  ;;  %s164_s13 = sshll.u32 %s229_s0, 4  ;;  %s165_s13 = int_to_ptr.vmem [resolvable:$true] %s164_s13 }
  0x13   :  { %v50_v11 = vadd.f32 %v48_v7, %v45_v9  ;;  %v51_v12 = vadd.f32 %v49_v8, %v46_v10  ;;  %v97_v38 = vld [vmem:[#allocation3 + $0x48] sm:$0xff]  ;;  %v112_v47 = vld [vmem:[#allocation3 + $0x50] sm:$0xff]  ;;  %v113_v48 = vld [vmem:[#allocation3 + $0x58] sm:$0xff]  ;;  %s201_s14 = scalar_lea.vmem %s165_s13, 2048  ;;  %p206_p6 = scmp.lt.s32.totalorder %s165_s13, %s165_s13 }
  0x14   :  { %v128_v57 = vld [vmem:[#allocation3 + $0x60] sm:$0xff]  ;;  %v129_v58 = vld [vmem:[#allocation3 + $0x68] sm:$0xff]  ;;  %v144_v4 = vld [vmem:[#allocation3 + $0x70] sm:$0xff]  ;;  %p202_p5 = scmp.ne.s32.totalorder %s165_s13, %s201_s14  ;;  %p207_p7 = scmp.lt.s32.totalorder %s201_s14, %s201_s14 }
  0x15   :  { %vm52_vm2 = vcmp.ge.f32.partialorder %v50_v11, 0.3  ;;  %vm53_vm3 = vcmp.ge.f32.partialorder %v51_v12, 0.3  ;;  %v145_v5 = vld [vmem:[#allocation3 + $0x78] sm:$0xff] }
  0x16   :  { %v54_v13 = vsel %vm52_vm2, 1.0, %v228_v2  ;;  %v59_v14 = vsel %vm52_vm2, 0.0, %v50_v11  ;;  %v55_v15 = vsel %vm53_vm3, 1.0, %v228_v2  ;;  %v60_v16 = vsel %vm53_vm3, 0.0, %v51_v12  ;;  %p208_p8 = por %p207_p7, %p206_p6 }
  0x17   :  { %57 = vst [vmem:[#allocation6 + $0x10] sm:$0xff] %v54_v13  ;;  %v61_v19 = vmul.f32 0.2, %v59_v14  ;;  %58 = vst [vmem:[#allocation6 + $0x18] sm:$0xff] %v55_v15  ;;  %v62_v20 = vmul.f32 0.2, %v60_v16 }
  0x18   :  { %p209_p9 = pnand %p208_p8, %p202_p5 }
  0x19   :  { %v66_v21 = vadd.f32 %v64_v17, %v61_v19  ;;  %v67_v22 = vadd.f32 %v65_v18, %v62_v20 }
  0x1b   :  { %vm68_vm4 = vcmp.ge.f32.partialorder %v66_v21, 0.3  ;;  %vm69_vm5 = vcmp.ge.f32.partialorder %v67_v22, 0.3 }
  0x1c   :  { %v70_v23 = vsel %vm68_vm4, 1.0, %v228_v2  ;;  %v75_v24 = vsel %vm68_vm4, 0.0, %v66_v21  ;;  %v71_v25 = vsel %vm69_vm5, 1.0, %v228_v2  ;;  %v76_v26 = vsel %vm69_vm5, 0.0, %v67_v22 }
  0x1d   :  { %73 = vst [vmem:[#allocation6 + $0x20] sm:$0xff] %v70_v23  ;;  %v77_v29 = vmul.f32 0.2, %v75_v24  ;;  %74 = vst [vmem:[#allocation6 + $0x28] sm:$0xff] %v71_v25  ;;  %v78_v30 = vmul.f32 0.2, %v76_v26 }
  0x1f   :  { %v82_v31 = vadd.f32 %v80_v27, %v77_v29  ;;  %v83_v32 = vadd.f32 %v81_v28, %v78_v30 }
  0x21   :  { %vm84_vm6 = vcmp.ge.f32.partialorder %v82_v31, 0.3  ;;  %vm85_vm7 = vcmp.ge.f32.partialorder %v83_v32, 0.3 }
  0x22   :  { %v86_v33 = vsel %vm84_vm6, 1.0, %v228_v2  ;;  %v91_v34 = vsel %vm84_vm6, 0.0, %v82_v31  ;;  %v87_v35 = vsel %vm85_vm7, 1.0, %v228_v2  ;;  %v92_v36 = vsel %vm85_vm7, 0.0, %v83_v32 }
  0x23   :  { %89 = vst [vmem:[#allocation6 + $0x30] sm:$0xff] %v86_v33  ;;  %v93_v39 = vmul.f32 0.2, %v91_v34  ;;  %90 = vst [vmem:[#allocation6 + $0x38] sm:$0xff] %v87_v35  ;;  %v94_v40 = vmul.f32 0.2, %v92_v36 }
  0x25   :  { %v98_v41 = vadd.f32 %v96_v37, %v93_v39  ;;  %v99_v42 = vadd.f32 %v97_v38, %v94_v40 }
  0x27   :  { %vm100_vm8 = vcmp.ge.f32.partialorder %v98_v41, 0.3  ;;  %vm101_vm9 = vcmp.ge.f32.partialorder %v99_v42, 0.3 }
  0x28   :  { %v102_v43 = vsel %vm100_vm8, 1.0, %v228_v2  ;;  %v107_v44 = vsel %vm100_vm8, 0.0, %v98_v41  ;;  %v103_v45 = vsel %vm101_vm9, 1.0, %v228_v2  ;;  %v108_v46 = vsel %vm101_vm9, 0.0, %v99_v42 }
  0x29   :  { %105 = vst [vmem:[#allocation6 + $0x40] sm:$0xff] %v102_v43  ;;  %v109_v49 = vmul.f32 0.2, %v107_v44  ;;  %106 = vst [vmem:[#allocation6 + $0x48] sm:$0xff] %v103_v45  ;;  %v110_v50 = vmul.f32 0.2, %v108_v46 }
  0x2b   :  { %v114_v51 = vadd.f32 %v112_v47, %v109_v49  ;;  %v115_v52 = vadd.f32 %v113_v48, %v110_v50 }
  0x2d   :  { %vm116_vm10 = vcmp.ge.f32.partialorder %v114_v51, 0.3  ;;  %vm117_vm11 = vcmp.ge.f32.partialorder %v115_v52, 0.3 }
  0x2e   :  { %v118_v53 = vsel %vm116_vm10, 1.0, %v228_v2  ;;  %v123_v54 = vsel %vm116_vm10, 0.0, %v114_v51  ;;  %v119_v55 = vsel %vm117_vm11, 1.0, %v228_v2  ;;  %v124_v56 = vsel %vm117_vm11, 0.0, %v115_v52 }
  0x2f   :  { %121 = vst [vmem:[#allocation6 + $0x50] sm:$0xff] %v118_v53  ;;  %v125_v59 = vmul.f32 0.2, %v123_v54  ;;  %122 = vst [vmem:[#allocation6 + $0x58] sm:$0xff] %v119_v55  ;;  %v126_v60 = vmul.f32 0.2, %v124_v56 }
  0x31   :  { %v130_v61 = vadd.f32 %v128_v57, %v125_v59  ;;  %v131_v62 = vadd.f32 %v129_v58, %v126_v60 }
  0x33   :  { %vm132_vm12 = vcmp.ge.f32.partialorder %v130_v61, 0.3  ;;  %vm133_vm13 = vcmp.ge.f32.partialorder %v131_v62, 0.3 }
  0x34   :  { %v134_v63 = vsel %vm132_vm12, 1.0, %v228_v2  ;;  %v139_v0 = vsel %vm132_vm12, 0.0, %v130_v61  ;;  %v135_v1 = vsel %vm133_vm13, 1.0, %v228_v2  ;;  %v140_v3 = vsel %vm133_vm13, 0.0, %v131_v62 }
  0x35   :  { %137 = vst [vmem:[#allocation6 + $0x60] sm:$0xff] %v134_v63  ;;  %v141_v6 = vmul.f32 0.2, %v139_v0  ;;  %138 = vst [vmem:[#allocation6 + $0x68] sm:$0xff] %v135_v1  ;;  %v142_v7 = vmul.f32 0.2, %v140_v3 }
  0x37   :  { %v146_v8 = vadd.f32 %v144_v4, %v141_v6  ;;  %v147_v9 = vadd.f32 %v145_v5, %v142_v7 }
  0x39   :  { %vm148_vm14 = vcmp.ge.f32.partialorder %v146_v8, 0.3  ;;  %vm149_vm15 = vcmp.ge.f32.partialorder %v147_v9, 0.3 }
  0x3a   :  { %v150_v10 = vsel %vm148_vm14, 1.0, %v228_v2  ;;  %v151_v11 = vsel %vm149_vm15, 1.0, %v228_v2 }
  0x3b   :  { %153 = vst [vmem:[#allocation6 + $0x70] sm:$0xff] %v150_v10  ;;  %154 = vst [vmem:[#allocation6 + $0x78] sm:$0xff] %v151_v11 }
  0x3c   :  { %212 = shalt.err (!%p209_p9)
}
  0x3d   :  { %170 = dma.vmem_to_hbm [thread:$0]  %s165_s13, 2048, %s269_s1, [#allocation5], %s226_s9, %s226_s9, %s227_s10  }
  0x3e   :  { %223 = dma.done.wait [#allocation5], 2048  }
  0x3f   :  { %224 = vsyncadd [#allocation5], 4294965248 }
  0x40   :  { %174 = vsyncpa [#allocation4], 1 }
  0x41   :  { %175 = vsyncpa [#allocation5], 1 }

</bundles_post_ra>
